<compile_context>
chip_gen: v7x
topology: tpu7x:2x2x1
jax: 0.10.0
libtpu: 0.0.40
codegen_flags: <defaults>
</compile_context>

<pallas_src>
import functools
import math

import jax
import jax.numpy as jnp
from jax.experimental import pallas as pl
from jax.experimental.pallas import tpu as pltpu


_MIN_GRID_BLOCKS = 8  # >= 4 blocks per TensorCore on v7x; gives DMA/compute overlap


def _static_pow(u, n: int):
    """u**n for a small static positive integer n, via square-and-multiply."""
    assert n >= 1
    result = None
    base = u
    while n:
        if n & 1:
            result = base if result is None else result * base
        n >>= 1
        if n:
            base = base * base
    return result


def _poly_cutoff_kernel(x_ref, o_ref, *, cutoff, start, inv_rng, p):
    a = -(p + 1) * (p + 2) / 2.0
    b = float(p * (p + 2))
    c = -p * (p + 1) / 2.0

    # Promote to f32 for the polynomial; cast back on store.
    x = x_ref[...].astype(jnp.float32)

    # clamp to [start, cutoff], normalize with a multiply (no divide).
    u = (jnp.clip(x, start, cutoff) - start) * inv_rng

    up = _static_pow(u, p)                      # u^p, square-and-multiply
    tail = a + u * (b + c * u)                  # a + b*u + c*u^2 (Horner)
    f = 1.0 + up * tail

    # Exactly 0 above the cutoff (reciprocal-multiply can leave ~1e-7 residue);
    # a free VPU select in a mem-bound kernel.  Below `start` u==0 -> f==1 exactly.
    f = jnp.where(x >= cutoff, 0.0, f)

    o_ref[...] = f.astype(o_ref.dtype)


def _poly_cutoff_jnp(x, cutoff, start, p):
    """Plain-jnp path (small inputs and the <lane-width tail)."""
    a = -(p + 1) * (p + 2) / 2.0
    b = float(p * (p + 2))
    c = -p * (p + 1) / 2.0
    inv_rng = 1.0 / (float(cutoff) - float(start))
    xf = x.astype(jnp.float32)
    u = (jnp.clip(xf, start, cutoff) - start) * inv_rng
    f = 1.0 + (u ** p) * (a + u * (b + c * u))
    f = jnp.where(xf >= cutoff, 0.0, f)
    return f.astype(x.dtype)


def _poly_cutoff_pallas_2d(x2d, cutoff, start, p, target_tile_bytes):
    """Run the kernel over a lane-dense (rows, L) slab; ragged last row-block OK."""
    rows, L = x2d.shape
    itemsize = jnp.dtype(x2d.dtype).itemsize

    # Biggest row-tile up to ~target_tile_bytes (multiple of 8 rows for sublanes)...
    target_rows = max(8, (target_tile_bytes // (L * itemsize)) // 8 * 8)
    if rows <= 8:
        block_rows = rows                    # full dim -> always a legal block
    else:
        # ...but keep at least _MIN_GRID_BLOCKS grid steps so both v7x TCs get
        # work and input/output DMA overlaps with compute.
        cap = -(-rows // _MIN_GRID_BLOCKS)   # ceil(rows / MIN_BLOCKS)
        cap = -(-cap // 8) * 8               # round up to a multiple of 8
        block_rows = max(8, min(target_rows, cap))
    grid = (-(-rows // block_rows),)         # ceil -> last block may be ragged

    # Explicit scoped-VMEM limit: (in + out) x double-buffered = 4x tile, plus
    # margin.  Safe on v5e (scoped default only 16 MiB) and within v7x's 64 MiB.
    block_bytes = block_rows * L * itemsize
    vmem_limit = max(4 << 20, min(4 * block_bytes + (2 << 20), 48 << 20))

    kernel = functools.partial(
        _poly_cutoff_kernel,
        cutoff=float(cutoff),
        start=float(start),
        inv_rng=1.0 / (float(cutoff) - float(start)),
        p=int(p),
    )

    return pl.pallas_call(
        kernel,
        out_shape=jax.ShapeDtypeStruct((rows, L), x2d.dtype),
        grid_spec=pltpu.PrefetchScalarGridSpec(
            num_scalar_prefetch=0,
            grid=grid,
            in_specs=[pl.BlockSpec((block_rows, L), lambda i: (i, 0))],
            out_specs=pl.BlockSpec((block_rows, L), lambda i: (i, 0)),
        ),
        compiler_params=pltpu.CompilerParams(
            dimension_semantics=("parallel",),
            vmem_limit_bytes=int(vmem_limit)),
        cost_estimate=pl.CostEstimate(
            flops=int((p + 10) * rows * L),
            transcendentals=0,
            bytes_accessed=int(2 * rows * L * itemsize)),
    )(x2d)


def polynomial_cutoff(x, cutoff: float, start: float = 0.0, p: int = 5, *,
                      target_tile_bytes: int = 4 << 20,
                      min_pallas_bytes: int = 2 << 20):
    assert float(start) < float(cutoff)
    p = int(p)
    assert p >= 1, "p must be >= 1"

    orig_shape = x.shape
    total = math.prod(orig_shape) if orig_shape else 1
    itemsize = jnp.dtype(x.dtype).itemsize

    # Small-input fast path: pallas_call launch + layout plumbing dominate there.
    if total * itemsize < min_pallas_bytes or total < 128:
        return _poly_cutoff_jnp(x, cutoff, start, p)

    flat = x.reshape(-1)  # contiguous row-major flatten: a free bitcast

    # Widest lane-dense width that divides `total` -> whole array through the
    # kernel with zero padding / slicing / extra HBM passes.
    for L in (512, 256, 128):
        if total % L == 0:
            out = _poly_cutoff_pallas_2d(flat.reshape(total // L, L),
                                         cutoff, start, p, target_tile_bytes)
            return out.reshape(orig_shape)

    # Ragged total: kernel on the largest 512-multiple prefix, plain jnp on the
    # (<512-element) tail, then a single concatenate.  One extra output pass,
    # instead of the old full-array pad + slice (two extra full passes).
    L = 512
    rem = total % L
    main = total - rem
    if main == 0:
        return _poly_cutoff_jnp(x, cutoff, start, p)
    main_out = _poly_cutoff_pallas_2d(flat[:main].reshape(main // L, L),
                                      cutoff, start, p, target_tile_bytes)
    tail_out = _poly_cutoff_jnp(flat[main:], cutoff, start, p)
    out = jnp.concatenate([main_out.reshape(-1), tail_out])
    return out.reshape(orig_shape)


def _reference(x, cutoff, start, p):
    """Literal translation of the PyTorch module (f32 math)."""
    rng = cutoff - start
    a = -(p + 1) * (p + 2) / 2.0
    b = p * (p + 2)
    c = -p * (p + 1) / 2.0
    xf = x.astype(jnp.float32)
    u = (jnp.clip(xf, start, cutoff) - start) / rng
    out = 1.0 + a * u ** p + b * u ** (p + 1) + c * u ** (p + 2)
    return out.astype(x.dtype)


if __name__ == "__main__":
    key = jax.random.PRNGKey(0)
    k1, k2, k3 = jax.random.split(key, 3)
    cutoff, start, p = 5.0, 0.5, 5

    # 1) Small distance-like tensor, forced through the Pallas path.
    x_small = jax.random.uniform(k1, (2, 4, 16, 16), dtype=jnp.float32,
                                 minval=-1.0, maxval=6.0)
    out_small = jax.block_until_ready(
        polynomial_cutoff(x_small, cutoff, start, p, min_pallas_bytes=0))
    assert out_small.shape == x_small.shape and out_small.dtype == x_small.dtype
    assert jnp.allclose(out_small, _reference(x_small, cutoff, start, p),
                        atol=1e-5, rtol=1e-5)

    # 2) Boundary semantics: exactly 1 at/below start, exactly 0 at/above cutoff.
    x_edge = jnp.array([start - 1.0, start, 0.5 * (start + cutoff),
                        cutoff, cutoff + 1.0], dtype=jnp.float32)
    out_edge = polynomial_cutoff(x_edge, cutoff, start, p)
    assert out_edge[0] == 1.0 and out_edge[1] == 1.0
    assert out_edge[3] == 0.0 and out_edge[4] == 0.0

    # 3) 512-divisible input: zero-copy kernel path, multi-block "parallel" grid.
    x_even = jax.random.uniform(k2, (512, 2048), dtype=jnp.float32,
                                minval=0.0, maxval=6.0)
    out_even = jax.block_until_ready(polynomial_cutoff(x_even, cutoff, start, p))
    assert jnp.allclose(out_even, _reference(x_even, cutoff, start, p),
                        atol=1e-5, rtol=1e-5)

    # 4) Ragged element count: kernel prefix + jnp tail + ragged last row-block.
    x_rag = jax.random.uniform(k3, (517, 1031), dtype=jnp.float32,
                               minval=-0.5, maxval=5.5)
    out_rag = jax.block_until_ready(polynomial_cutoff(x_rag, cutoff, start, p))
    assert out_rag.shape == x_rag.shape
    assert jnp.allclose(out_rag, _reference(x_rag, cutoff, start, p),
                        atol=1e-5, rtol=1e-5)

    # 5) bf16 in/out through the Pallas path (f32 math inside the kernel).
    x_bf = x_small.astype(jnp.bfloat16)
    out_bf = jax.block_until_ready(
        polynomial_cutoff(x_bf, cutoff, start, p, min_pallas_bytes=0))
    assert out_bf.dtype == jnp.bfloat16
    assert jnp.allclose(out_bf.astype(jnp.float32),
                        _reference(x_bf, cutoff, start, p).astype(jnp.float32),
                        atol=2e-2, rtol=2e-2)

    print("KERNEL_OK")
</pallas_src>

<mosaic_0001>
module attributes {stable_mosaic.version = 11 : i64} {
  func.func @_poly_cutoff_kernel(%arg0: i32, %arg1: memref<4x512xf32, #tpu.memory_space<vmem>>, %arg2: memref<4x512xf32, #tpu.memory_space<vmem>>) attributes {dimension_semantics = [#tpu.dimension_semantics<parallel>], iteration_bounds = array<i64: 1>, scalar_prefetch = 0 : i64, scratch_operands = 0 : i64, tpu.core_type = #tpu.core_type<tc>, window_params = [{transform_indices = @transform_0, window_bounds = array<i64: 4, 512>}, {transform_indices = @transform_1, window_bounds = array<i64: 4, 512>}]} {
    %c0 = arith.constant 0 : index
    %c0_0 = arith.constant 0 : index
    %0 = vector.load %arg1[%c0, %c0_0] : memref<4x512xf32, #tpu.memory_space<vmem>>, vector<4x512xf32>
    %cst = arith.constant 5.000000e-01 : f32
    %cst_1 = arith.constant 5.000000e+00 : f32
    %1 = vector.broadcast %cst : f32 to vector<4x512xf32>
    %2 = arith.maximumf %1, %0 : vector<4x512xf32>
    %3 = vector.broadcast %cst_1 : f32 to vector<4x512xf32>
    %4 = arith.minimumf %3, %2 : vector<4x512xf32>
    %cst_2 = arith.constant 5.000000e-01 : f32
    %5 = vector.broadcast %cst_2 : f32 to vector<4x512xf32>
    %6 = arith.subf %4, %5 : vector<4x512xf32>
    %cst_3 = arith.constant 0.222222224 : f32
    %7 = vector.broadcast %cst_3 : f32 to vector<4x512xf32>
    %8 = arith.mulf %6, %7 : vector<4x512xf32>
    %9 = arith.mulf %8, %8 : vector<4x512xf32>
    %10 = arith.mulf %9, %9 : vector<4x512xf32>
    %11 = arith.mulf %8, %10 : vector<4x512xf32>
    %cst_4 = arith.constant -1.500000e+01 : f32
    %12 = vector.broadcast %cst_4 : f32 to vector<4x512xf32>
    %13 = arith.mulf %12, %8 : vector<4x512xf32>
    %cst_5 = arith.constant 3.500000e+01 : f32
    %14 = vector.broadcast %cst_5 : f32 to vector<4x512xf32>
    %15 = arith.addf %14, %13 : vector<4x512xf32>
    %16 = arith.mulf %8, %15 : vector<4x512xf32>
    %cst_6 = arith.constant -2.100000e+01 : f32
    %17 = vector.broadcast %cst_6 : f32 to vector<4x512xf32>
    %18 = arith.addf %17, %16 : vector<4x512xf32>
    %19 = arith.mulf %11, %18 : vector<4x512xf32>
    %cst_7 = arith.constant 1.000000e+00 : f32
    %20 = vector.broadcast %cst_7 : f32 to vector<4x512xf32>
    %21 = arith.addf %20, %19 : vector<4x512xf32>
    %cst_8 = arith.constant 5.000000e+00 : f32
    %22 = vector.broadcast %cst_8 : f32 to vector<4x512xf32>
    %23 = arith.cmpf oge, %0, %22 : vector<4x512xf32>
    %cst_9 = arith.constant 0.000000e+00 : f32
    %24 = vector.broadcast %cst_9 : f32 to vector<4x512xf32>
    %25 = arith.select %23, %24, %21 : vector<4x512xi1>, vector<4x512xf32>
    %c0_10 = arith.constant 0 : index
    %c0_11 = arith.constant 0 : index
    %26 = vector.load %arg2[%c0_10, %c0_11] : memref<4x512xf32, #tpu.memory_space<vmem>>, vector<4x512xf32>
    tpu.vector_store %arg2[%c0_10, %c0_11], %25 {strides = array<i32>} : memref<4x512xf32, #tpu.memory_space<vmem>>, vector<4x512xf32>,
    return
  }
  func.func @transform_0(%arg0: i32) -> (i32, i32) {
    %c0_i32 = arith.constant 0 : i32
    %c0_i32_0 = arith.constant 0 : i32
    return %arg0, %c0_i32 : i32, i32
  }
  func.func @transform_1(%arg0: i32) -> (i32, i32) {
    %c0_i32 = arith.constant 0 : i32
    %c0_i32_0 = arith.constant 0 : i32
    return %arg0, %c0_i32 : i32, i32
  }
}

</mosaic_0001>

<bundles_post_ra>
// kernel: tpu_custom_call.1
= control target key start
LH: loop header
LB: loop body
LE: loop exit
PB: predicated region body
PF: predicated region fallthrough
CT: control target
= control target key end

     0   :  { %6 = vsyncpa [#allocation3], 0  ;;  %s158_s0 = inlined_call_operand.hbm [shape: f32[4,512], index: 0, kind: input, shape index: {}]   ;;  %s159_s1 = inlined_call_operand.hbm [shape: f32[4,512], index: 1, kind: output, shape index: {}]  }
   0x1   :  { %7 = vsyncpa [#allocation4], 0  ;;  %s122_s6 = smov [#allocation2]   ;;  %s74_s10 = scalar_lea.hbm %s158_s0, 256 }
   0x2   :  { %s14_s7 = sshll.u32 %s122_s6, 4  ;;  %p75_p0 = scmp.ne.s32.totalorder %s158_s0, %s74_s10  ;;  %s15_s7 = int_to_ptr.vmem [resolvable:$true] %s14_s7 }
   0x3   :  { %p78_p1 = scmp.lt.u32.totalorder %s74_s10, %s158_s0 }
   0x5   :  { %p80_p2 = pnand %p78_p1, %p75_p0 }
   0x7   :  { %83 = shalt.err (!%p80_p2)
}
   0x8   :  { %s84_s15 = scalar_lea.vmem %s15_s7, 256  ;;  %p89_p4 = scmp.lt.s32.totalorder %s15_s7, %s15_s7 }
   0x9   :  { %p85_p3 = scmp.ne.s32.totalorder %s15_s7, %s84_s15  ;;  %p90_p5 = scmp.lt.s32.totalorder %s84_s15, %s84_s15 }
   0xb   :  { %p91_p6 = por %p90_p5, %p89_p4 }
   0xd   :  { %p92_p7 = pnand %p91_p6, %p85_p3 }
   0xf   :  { %95 = shalt.err (!%p92_p7)
}
  0x10   :  { %17 = dma.hbm_to_vmem [thread:$0]  %s158_s0, 256, %s15_s7, [#allocation3]  }
  0x11   :  { %118 = dma.done.wait [#allocation3], 256  }
  0x12   :  { %119 = vsyncadd [#allocation3], 4294967040  ;;  %v21_v0 = vld [vmem:[#allocation2] sm:$0xff]  ;;  %v22_v1 = vld [vmem:[#allocation2 + $0x8] sm:$0xff]  ;;  %s123_s0 = smov [#allocation5]  }
  0x13   :  { %v23_v2 = vmax.f32 %v21_v0, 0.5  ;;  %v24_v3 = vmax.f32 %v22_v1, 0.5  ;;  %s61_s18 = sshll.u32 %s123_s0, 4  ;;  %vm49_vm0 = vcmp.ge.f32.partialorder %v21_v0, 5.0  ;;  %vm50_vm1 = vcmp.ge.f32.partialorder %v22_v1, 5.0  ;;  %s62_s18 = int_to_ptr.vmem [resolvable:$true] %s61_s18 }
  0x14   :  { %s96_s19 = scalar_lea.vmem %s62_s18, 256  ;;  %p101_p9 = scmp.lt.s32.totalorder %s62_s18, %s62_s18 }
  0x15   :  { %v25_v4 = vmin.f32 %v23_v2, 5.0  ;;  %v26_v5 = vmin.f32 %v24_v3, 5.0  ;;  %p97_p8 = scmp.ne.s32.totalorder %s62_s18, %s96_s19  ;;  %p102_p10 = scmp.lt.s32.totalorder %s96_s19, %s96_s19 }
  0x17   :  { %v70_v6 = vadd.f32 -0.5, %v25_v4  ;;  %v71_v7 = vadd.f32 -0.5, %v26_v5  ;;  %p103_p11 = por %p102_p10, %p101_p9 }
  0x19   :  { %v29_v8 = vmul.f32 0.22222222, %v70_v6  ;;  %v30_v9 = vmul.f32 0.22222222, %v71_v7  ;;  %p104_p12 = pnand %p103_p11, %p97_p8 }
  0x1b   :  { %v31_v10 = vmul.f32 %v29_v8, %v29_v8  ;;  %v37_v11 = vmul.f32 -15.0, %v29_v8  ;;  %v32_v12 = vmul.f32 %v30_v9, %v30_v9  ;;  %v38_v13 = vmul.f32 -15.0, %v30_v9 }
  0x1d   :  { %v33_v14 = vmul.f32 %v31_v10, %v31_v10  ;;  %v39_v15 = vadd.f32 35.0, %v37_v11  ;;  %v34_v16 = vmul.f32 %v32_v12, %v32_v12  ;;  %v40_v17 = vadd.f32 35.0, %v38_v13 }
  0x1f   :  { %v35_v18 = vmul.f32 %v33_v14, %v29_v8  ;;  %v41_v19 = vmul.f32 %v39_v15, %v29_v8  ;;  %v36_v20 = vmul.f32 %v34_v16, %v30_v9  ;;  %v42_v21 = vmul.f32 %v40_v17, %v30_v9 }
  0x21   :  { %v43_v22 = vadd.f32 -21.0, %v41_v19  ;;  %v44_v23 = vadd.f32 -21.0, %v42_v21 }
  0x23   :  { %v45_v24 = vmul.f32 %v43_v22, %v35_v18  ;;  %v46_v25 = vmul.f32 %v44_v23, %v36_v20 }
  0x25   :  { %v47_v26 = vadd.f32 1.0, %v45_v24  ;;  %v48_v27 = vadd.f32 1.0, %v46_v25 }
  0x27   :  { %v51_v28 = vsel %vm49_vm0, 0.0, %v47_v26  ;;  %v52_v29 = vsel %vm50_vm1, 0.0, %v48_v27 }
  0x28   :  { %53 = vst [vmem:[#allocation5] sm:$0xff] %v51_v28  ;;  %54 = vst [vmem:[#allocation5 + $0x8] sm:$0xff] %v52_v29 }
  0x29   :  { %107 = shalt.err (!%p104_p12)
}
  0x2a   :  { %s108_s22 = scalar_lea.hbm %s159_s1, 256 }
  0x2b   :  { %p109_p13 = scmp.ne.s32.totalorder %s159_s1, %s108_s22  ;;  %p112_p0 = scmp.lt.u32.totalorder %s108_s22, %s159_s1 }
  0x2d   :  { %p114_p1 = pnand %p112_p0, %p109_p13 }
  0x2f   :  { %117 = shalt.err (!%p114_p1)
}
  0x30   :  { %64 = dma.vmem_to_hbm [thread:$0]  %s62_s18, 256, %s159_s1, [#allocation4]  }
  0x31   :  { %120 = dma.done.wait [#allocation4], 256  }
  0x32   :  { %121 = vsyncadd [#allocation4], 4294967040 }
  0x33   :  { %68 = vsyncpa [#allocation3], 1 }
  0x34   :  { %69 = vsyncpa [#allocation4], 1 }

</bundles_post_ra>
